<compile_context>
chip_gen: v5e
topology: v5e:2x2
jax: 0.10.0
libtpu: 0.0.40
codegen_flags: <defaults>
</compile_context>

<pallas_src>
import functools

import jax
import jax.numpy as jnp
from jax import lax
from jax.experimental import pallas as pl
from jax.experimental.pallas import tpu as pltpu

SMOOTH_NR = 1e-5
SMOOTH_DR = 1e-5

DEFAULT_ROW_TILE = 256          # rows of 128 lanes per grid step (~0.5-1 MiB/step)


def _round_up(x, m):
    return (x + m - 1) // m * m


def _sublane_granularity(dtype):
    bits = jnp.dtype(dtype).itemsize * 8
    return {32: 8, 16: 16, 8: 32}.get(bits, 8)


def _dsc_partials_kernel(pred_ref, true_ref, out_ref, *,
                         C, c0, num_fg, r_tile, hw, padded):
    """One (batch, spatial-tile) grid step.

    pred_ref / true_ref : (1, C, r_tile, 128) blocks
    out_ref             : (1, 3*num_fg, 8, 128) resident accumulator
                          rows [0*num_fg + i] -> inter,  [1*num_fg + i] -> ground_o,
                          rows [2*num_fg + i] -> pred_o  for fg channel i.
    """
    j = pl.program_id(1)

    @pl.when(j == 0)
    def _init():
        out_ref[...] = jnp.zeros_like(out_ref)

    # ---- channel softmax as elementwise ops across channel slabs (VPU only) ----
    m = pred_ref[0, 0].astype(jnp.float32)
    for c in range(1, C):
        m = jnp.maximum(m, pred_ref[0, c].astype(jnp.float32))

    s = None
    e_fg = [None] * C
    for c in range(C):
        e = jnp.exp(pred_ref[0, c].astype(jnp.float32) - m)
        s = e if s is None else s + e
        if c >= c0:                       # only keep foreground exponentials
            e_fg[c] = e

    # One per-pixel reciprocal (EUP approx) + one Newton step (restores ~f32 acc.)
    inv = pl.reciprocal(s, approx=True)
    inv = inv * (2.0 - s * inv)

    if padded:
        # Zero out softmax probs on padded pixels so pred_o / inter are not inflated.
        row = lax.broadcasted_iota(jnp.int32, (r_tile, 128), 0)
        lane = lax.broadcasted_iota(jnp.int32, (r_tile, 128), 1)
        pix = (j * r_tile + row) * 128 + lane
        inv = jnp.where(pix < hw, inv, 0.0)

    # (r_tile, 128) -> (8, 128) via vreg-aligned elementwise adds (no XLU in hot loop).
    nsub = r_tile // 8

    def _fold(x):
        acc = x[0:8, :]
        for k in range(1, nsub):
            acc = acc + x[8 * k:8 * (k + 1), :]
        return acc

    # ---- foreground-only partial sums, accumulated in the resident output ----
    for idx, c in enumerate(range(c0, C)):
        p = e_fg[c] * inv                                  # softmax prob
        t = true_ref[0, c].astype(jnp.float32)
        out_ref[0, 0 * num_fg + idx] += _fold(p * t)       # intersection
        out_ref[0, 1 * num_fg + idx] += _fold(t)           # ground_o
        out_ref[0, 2 * num_fg + idx] += _fold(p)           # pred_o


def dice_loss_pallas(y_pred, y_true, include_background=False,
                     smooth_nr=SMOOTH_NR, smooth_dr=SMOOTH_DR,
                     row_tile=DEFAULT_ROW_TILE):
    B, C, H, W = y_pred.shape
    assert y_true.shape == (B, C, H, W)
    HW = H * W

    c0 = 0 if include_background else 1
    num_fg = C - c0
    if num_fg <= 0:
        raise ValueError("need at least one foreground channel")

    # Lane-dense layout: (B, C, HW) -> (B, C, R, 128), R padded to the packing
    # granularity of the widest-packed input dtype (f32:8, bf16:16, int8:32 rows).
    gran = max(_sublane_granularity(y_pred.dtype),
               _sublane_granularity(y_true.dtype), 8)
    R = _round_up(pl.cdiv(HW, 128), gran)

    # Pick a row tile that divides R exactly (avoids large HBM pad copies) and is
    # a multiple of the granularity.  Sweepable; ~0.5-1 MiB per step by default.
    r_tile = min(_round_up(row_tile, gran), R)
    while R % r_tile != 0:
        r_tile -= gran
    num_j = R // r_tile

    pad_px = R * 128 - HW
    pred = y_pred.reshape(B, C, HW)          # native dtype; cast happens in-kernel
    true = y_true.reshape(B, C, HW)
    if pad_px:
        pred = jnp.pad(pred, ((0, 0), (0, 0), (0, pad_px)))
        true = jnp.pad(true, ((0, 0), (0, 0), (0, pad_px)))
    pred = pred.reshape(B, C, R, 128)
    true = true.reshape(B, C, R, 128)

    kernel = functools.partial(
        _dsc_partials_kernel, C=C, c0=c0, num_fg=num_fg,
        r_tile=r_tile, hw=HW, padded=bool(pad_px))

    partials = pl.pallas_call(
        kernel,
        out_shape=jax.ShapeDtypeStruct((B, 3 * num_fg, 8, 128), jnp.float32),
        grid_spec=pltpu.PrefetchScalarGridSpec(
            num_scalar_prefetch=0,
            grid=(B, num_j),
            in_specs=[
                pl.BlockSpec((1, C, r_tile, 128), lambda b, j: (b, 0, j, 0)),
                pl.BlockSpec((1, C, r_tile, 128), lambda b, j: (b, 0, j, 0)),
            ],
            out_specs=pl.BlockSpec((1, 3 * num_fg, 8, 128),
                                   lambda b, j: (b, 0, 0, 0)),
        ),
        compiler_params=pltpu.CompilerParams(
            dimension_semantics=("parallel", "arbitrary"),   # B shards on megacore
            vmem_limit_bytes=32 * 1024 * 1024),
    )(pred, true)

    # Finalize in JAX (tiny): collapse the (8,128) accumulator tiles, then form f.
    sums = partials.reshape(B, 3, num_fg, 8 * 128).sum(axis=-1)   # (B, 3, num_fg)
    inter, ground_o, pred_o = sums[:, 0], sums[:, 1], sums[:, 2]
    f = 1.0 - (2.0 * inter + smooth_nr) / (ground_o + pred_o + smooth_dr)
    return jnp.mean(f)


def dsc_loss(y_pred, y_true, shape_priors=(), include_background=False):
    """Equivalent of DSCLoss.forward (softmax-check warning omitted: no value effect)."""
    loss = dice_loss_pallas(y_pred, y_true, include_background=include_background)
    if shape_priors:
        # TODO(synk): shape_priors are arbitrary user-supplied callables in the
        # original module; they are applied in plain JAX on y_pred[:, 2] (squeezed),
        # matching the PyTorch forward.
        ch2 = y_pred[:, 2]
        if ch2.shape[0] == 1:
            ch2 = ch2[0]
        for s in shape_priors:
            loss = loss + s(ch2)
    return loss


def _reference_dsc(y_pred, y_true, include_background=False):
    p = jax.nn.softmax(y_pred, axis=1)
    t = y_true
    if not include_background:
        p = p[:, 1:]
        t = t[:, 1:]
    inter = jnp.sum(p * t, axis=(2, 3))
    ground_o = jnp.sum(t, axis=(2, 3))
    pred_o = jnp.sum(p, axis=(2, 3))
    f = 1.0 - (2.0 * inter + SMOOTH_NR) / (ground_o + pred_o + SMOOTH_DR)
    return jnp.mean(f)


if __name__ == "__main__":
    key = jax.random.PRNGKey(0)
    k_pred, k_lbl = jax.random.split(key)

    B, C, H, W = 2, 4, 16, 16
    y_pred = jax.random.normal(k_pred, (B, C, H, W), dtype=jnp.float32)
    labels = jax.random.randint(k_lbl, (B, H, W), 0, C)
    y_true_f32 = jax.nn.one_hot(labels, C, axis=1, dtype=jnp.float32)   # (B, C, H, W)
    y_true = y_true_f32.astype(jnp.bfloat16)   # narrow target stream (0/1 exact in bf16)

    loss = dsc_loss(y_pred, y_true, shape_priors=(), include_background=False)
    loss = jax.block_until_ready(loss)

    ref = _reference_dsc(y_pred, y_true_f32, include_background=False)
    assert jnp.allclose(loss, ref, rtol=1e-4, atol=1e-5), (loss, ref)

    print("KERNEL_OK")
</pallas_src>

<mosaic_0001>
module attributes {stable_mosaic.version = 11 : i64} {
  func.func @_dsc_partials_kernel(%arg0: i32, %arg1: i32, %arg2: memref<1x4x16x128xf32, #tpu.memory_space<vmem>>, %arg3: memref<1x4x16x128xbf16, #tpu.memory_space<vmem>>, %arg4: memref<1x9x8x128xf32, #tpu.memory_space<vmem>>) attributes {dimension_semantics = [#tpu.dimension_semantics<parallel>, #tpu.dimension_semantics<arbitrary>], iteration_bounds = array<i64: 2, 1>, scalar_prefetch = 0 : i64, scratch_operands = 0 : i64, tpu.core_type = #tpu.core_type<tc>, window_params = [{transform_indices = @transform_0, window_bounds = array<i64: 1, 4, 16, 128>}, {transform_indices = @transform_1, window_bounds = array<i64: 1, 4, 16, 128>}, {transform_indices = @transform_2, window_bounds = array<i64: 1, 9, 8, 128>}]} {
    %c0_i32 = arith.constant 0 : i32
    %0 = arith.cmpi eq, %arg1, %c0_i32 : i32
    %1 = arith.extui %0 : i1 to i32
    %c0_i32_0 = arith.constant 0 : i32
    %2 = arith.cmpi ne, %1, %c0_i32_0 : i32
    scf.if %2 {
      %cst_109 = arith.constant 0.000000e+00 : f32
      %146 = vector.broadcast %cst_109 : f32 to vector<1x9x8x128xf32>
      %c0_110 = arith.constant 0 : index
      %c0_111 = arith.constant 0 : index
      %c0_112 = arith.constant 0 : index
      %c0_113 = arith.constant 0 : index
      %147 = vector.load %arg4[%c0_110, %c0_111, %c0_112, %c0_113] : memref<1x9x8x128xf32, #tpu.memory_space<vmem>>, vector<1x9x8x128xf32>
      tpu.vector_store %arg4[%c0_110, %c0_111, %c0_112, %c0_113], %146 {strides = array<i32>} : memref<1x9x8x128xf32, #tpu.memory_space<vmem>>, vector<1x9x8x128xf32>,
    } else {
    }
    %c0 = arith.constant 0 : index
    %c0_1 = arith.constant 0 : index
    %c0_2 = arith.constant 0 : index
    %c0_3 = arith.constant 0 : index
    %3 = vector.load %arg2[%c0, %c0_1, %c0_2, %c0_3] : memref<1x4x16x128xf32, #tpu.memory_space<vmem>>, vector<1x1x16x128xf32>
    %4 = vector.shape_cast %3 : vector<1x1x16x128xf32> to vector<16x128xf32>
    %c0_4 = arith.constant 0 : index
    %c1 = arith.constant 1 : index
    %c0_5 = arith.constant 0 : index
    %c0_6 = arith.constant 0 : index
    %5 = vector.load %arg2[%c0_4, %c1, %c0_5, %c0_6] : memref<1x4x16x128xf32, #tpu.memory_space<vmem>>, vector<1x1x16x128xf32>
    %6 = vector.shape_cast %5 : vector<1x1x16x128xf32> to vector<16x128xf32>
    %7 = arith.maximumf %4, %6 : vector<16x128xf32>
    %c0_7 = arith.constant 0 : index
    %c2 = arith.constant 2 : index
    %c0_8 = arith.constant 0 : index
    %c0_9 = arith.constant 0 : index
    %8 = vector.load %arg2[%c0_7, %c2, %c0_8, %c0_9] : memref<1x4x16x128xf32, #tpu.memory_space<vmem>>, vector<1x1x16x128xf32>
    %9 = vector.shape_cast %8 : vector<1x1x16x128xf32> to vector<16x128xf32>
    %10 = arith.maximumf %7, %9 : vector<16x128xf32>
    %c0_10 = arith.constant 0 : index
    %c3 = arith.constant 3 : index
    %c0_11 = arith.constant 0 : index
    %c0_12 = arith.constant 0 : index
    %11 = vector.load %arg2[%c0_10, %c3, %c0_11, %c0_12] : memref<1x4x16x128xf32, #tpu.memory_space<vmem>>, vector<1x1x16x128xf32>
    %12 = vector.shape_cast %11 : vector<1x1x16x128xf32> to vector<16x128xf32>
    %13 = arith.maximumf %10, %12 : vector<16x128xf32>
    %c0_13 = arith.constant 0 : index
    %c0_14 = arith.constant 0 : index
    %c0_15 = arith.constant 0 : index
    %c0_16 = arith.constant 0 : index
    %14 = vector.load %arg2[%c0_13, %c0_14, %c0_15, %c0_16] : memref<1x4x16x128xf32, #tpu.memory_space<vmem>>, vector<1x1x16x128xf32>
    %15 = vector.shape_cast %14 : vector<1x1x16x128xf32> to vector<16x128xf32>
    %16 = arith.subf %15, %13 : vector<16x128xf32>
    %17 = math.exp %16 : vector<16x128xf32>
    %c0_17 = arith.constant 0 : index
    %c1_18 = arith.constant 1 : index
    %c0_19 = arith.constant 0 : index
    %c0_20 = arith.constant 0 : index
    %18 = vector.load %arg2[%c0_17, %c1_18, %c0_19, %c0_20] : memref<1x4x16x128xf32, #tpu.memory_space<vmem>>, vector<1x1x16x128xf32>
    %19 = vector.shape_cast %18 : vector<1x1x16x128xf32> to vector<16x128xf32>
    %20 = arith.subf %19, %13 : vector<16x128xf32>
    %21 = math.exp %20 : vector<16x128xf32>
    %22 = arith.addf %17, %21 : vector<16x128xf32>
    %c0_21 = arith.constant 0 : index
    %c2_22 = arith.constant 2 : index
    %c0_23 = arith.constant 0 : index
    %c0_24 = arith.constant 0 : index
    %23 = vector.load %arg2[%c0_21, %c2_22, %c0_23, %c0_24] : memref<1x4x16x128xf32, #tpu.memory_space<vmem>>, vector<1x1x16x128xf32>
    %24 = vector.shape_cast %23 : vector<1x1x16x128xf32> to vector<16x128xf32>
    %25 = arith.subf %24, %13 : vector<16x128xf32>
    %26 = math.exp %25 : vector<16x128xf32>
    %27 = arith.addf %22, %26 : vector<16x128xf32>
    %c0_25 = arith.constant 0 : index
    %c3_26 = arith.constant 3 : index
    %c0_27 = arith.constant 0 : index
    %c0_28 = arith.constant 0 : index
    %28 = vector.load %arg2[%c0_25, %c3_26, %c0_27, %c0_28] : memref<1x4x16x128xf32, #tpu.memory_space<vmem>>, vector<1x1x16x128xf32>
    %29 = vector.shape_cast %28 : vector<1x1x16x128xf32> to vector<16x128xf32>
    %30 = arith.subf %29, %13 : vector<16x128xf32>
    %31 = math.exp %30 : vector<16x128xf32>
    %32 = arith.addf %27, %31 : vector<16x128xf32>
    %33 = tpu.reciprocal %32 {approx = true} : vector<16x128xf32> -> vector<16x128xf32>
    %34 = arith.mulf %32, %33 : vector<16x128xf32>
    %cst = arith.constant 2.000000e+00 : f32
    %35 = vector.broadcast %cst : f32 to vector<16x128xf32>
    %36 = arith.subf %35, %34 : vector<16x128xf32>
    %37 = arith.mulf %33, %36 : vector<16x128xf32>
    %38 = tpu.iota {dimensions = array<i32: 0>} : vector<16x128xi32>
    %39 = tpu.iota {dimensions = array<i32: 1>} : vector<16x128xi32>
    %c16_i32 = arith.constant 16 : i32
    %40 = arith.muli %arg1, %c16_i32 : i32
    %41 = vector.broadcast %40 : i32 to vector<16x128xi32>
    %42 = arith.addi %41, %38 : vector<16x128xi32>
    %c128_i32 = arith.constant 128 : i32
    %43 = vector.broadcast %c128_i32 : i32 to vector<16x128xi32>
    %44 = arith.muli %42, %43 : vector<16x128xi32>
    %45 = arith.addi %44, %39 : vector<16x128xi32>
    %c256_i32 = arith.constant 256 : i32
    %46 = vector.broadcast %c256_i32 : i32 to vector<16x128xi32>
    %47 = arith.cmpi slt, %45, %46 : vector<16x128xi32>
    %cst_29 = arith.constant 0.000000e+00 : f32
    %48 = vector.broadcast %cst_29 : f32 to vector<16x128xf32>
    %49 = arith.select %47, %37, %48 : vector<16x128xi1>, vector<16x128xf32>
    %50 = arith.mulf %21, %49 : vector<16x128xf32>
    %c0_30 = arith.constant 0 : index
    %c1_31 = arith.constant 1 : index
    %c0_32 = arith.constant 0 : index
    %c0_33 = arith.constant 0 : index
    %51 = vector.load %arg3[%c0_30, %c1_31, %c0_32, %c0_33] : memref<1x4x16x128xbf16, #tpu.memory_space<vmem>>, vector<1x1x16x128xbf16>
    %52 = vector.shape_cast %51 : vector<1x1x16x128xbf16> to vector<16x128xbf16>
    %53 = arith.extf %52 : vector<16x128xbf16> to vector<16x128xf32>
    %c0_34 = arith.constant 0 : index
    %c0_35 = arith.constant 0 : index
    %c0_36 = arith.constant 0 : index
    %c0_37 = arith.constant 0 : index
    %54 = vector.load %arg4[%c0_34, %c0_35, %c0_36, %c0_37] : memref<1x9x8x128xf32, #tpu.memory_space<vmem>>, vector<1x1x8x128xf32>
    %55 = vector.shape_cast %54 : vector<1x1x8x128xf32> to vector<8x128xf32>
    %56 = arith.mulf %50, %53 : vector<16x128xf32>
    %57 = vector.extract_strided_slice %56 {offsets = [0, 0], sizes = [8, 128], strides = [1, 1]} : vector<16x128xf32> to vector<8x128xf32>
    %58 = vector.extract_strided_slice %56 {offsets = [8, 0], sizes = [8, 128], strides = [1, 1]} : vector<16x128xf32> to vector<8x128xf32>
    %59 = arith.addf %57, %58 : vector<8x128xf32>
    %60 = arith.addf %55, %59 : vector<8x128xf32>
    %c0_38 = arith.constant 0 : index
    %c0_39 = arith.constant 0 : index
    %c0_40 = arith.constant 0 : index
    %c0_41 = arith.constant 0 : index
    %61 = vector.load %arg4[%c0_38, %c0_39, %c0_40, %c0_41] : memref<1x9x8x128xf32, #tpu.memory_space<vmem>>, vector<1x1x8x128xf32>
    %62 = vector.shape_cast %61 : vector<1x1x8x128xf32> to vector<8x128xf32>
    %63 = vector.shape_cast %60 : vector<8x128xf32> to vector<1x1x8x128xf32>
    tpu.vector_store %arg4[%c0_38, %c0_39, %c0_40, %c0_41], %63 {strides = array<i32>} : memref<1x9x8x128xf32, #tpu.memory_space<vmem>>, vector<1x1x8x128xf32>,
    %c0_42 = arith.constant 0 : index
    %c3_43 = arith.constant 3 : index
    %c0_44 = arith.constant 0 : index
    %c0_45 = arith.constant 0 : index
    %64 = vector.load %arg4[%c0_42, %c3_43, %c0_44, %c0_45] : memref<1x9x8x128xf32, #tpu.memory_space<vmem>>, vector<1x1x8x128xf32>
    %65 = vector.shape_cast %64 : vector<1x1x8x128xf32> to vector<8x128xf32>
    %66 = vector.extract_strided_slice %53 {offsets = [0, 0], sizes = [8, 128], strides = [1, 1]} : vector<16x128xf32> to vector<8x128xf32>
    %67 = vector.extract_strided_slice %53 {offsets = [8, 0], sizes = [8, 128], strides = [1, 1]} : vector<16x128xf32> to vector<8x128xf32>
    %68 = arith.addf %66, %67 : vector<8x128xf32>
    %69 = arith.addf %65, %68 : vector<8x128xf32>
    %c0_46 = arith.constant 0 : index
    %c3_47 = arith.constant 3 : index
    %c0_48 = arith.constant 0 : index
    %c0_49 = arith.constant 0 : index
    %70 = vector.load %arg4[%c0_46, %c3_47, %c0_48, %c0_49] : memref<1x9x8x128xf32, #tpu.memory_space<vmem>>, vector<1x1x8x128xf32>
    %71 = vector.shape_cast %70 : vector<1x1x8x128xf32> to vector<8x128xf32>
    %72 = vector.shape_cast %69 : vector<8x128xf32> to vector<1x1x8x128xf32>
    tpu.vector_store %arg4[%c0_46, %c3_47, %c0_48, %c0_49], %72 {strides = array<i32>} : memref<1x9x8x128xf32, #tpu.memory_space<vmem>>, vector<1x1x8x128xf32>,
    %c0_50 = arith.constant 0 : index
    %c6 = arith.constant 6 : index
    %c0_51 = arith.constant 0 : index
    %c0_52 = arith.constant 0 : index
    %73 = vector.load %arg4[%c0_50, %c6, %c0_51, %c0_52] : memref<1x9x8x128xf32, #tpu.memory_space<vmem>>, vector<1x1x8x128xf32>
    %74 = vector.shape_cast %73 : vector<1x1x8x128xf32> to vector<8x128xf32>
    %75 = vector.extract_strided_slice %50 {offsets = [0, 0], sizes = [8, 128], strides = [1, 1]} : vector<16x128xf32> to vector<8x128xf32>
    %76 = vector.extract_strided_slice %50 {offsets = [8, 0], sizes = [8, 128], strides = [1, 1]} : vector<16x128xf32> to vector<8x128xf32>
    %77 = arith.addf %75, %76 : vector<8x128xf32>
    %78 = arith.addf %74, %77 : vector<8x128xf32>
    %c0_53 = arith.constant 0 : index
    %c6_54 = arith.constant 6 : index
    %c0_55 = arith.constant 0 : index
    %c0_56 = arith.constant 0 : index
    %79 = vector.load %arg4[%c0_53, %c6_54, %c0_55, %c0_56] : memref<1x9x8x128xf32, #tpu.memory_space<vmem>>, vector<1x1x8x128xf32>
    %80 = vector.shape_cast %79 : vector<1x1x8x128xf32> to vector<8x128xf32>
    %81 = vector.shape_cast %78 : vector<8x128xf32> to vector<1x1x8x128xf32>
    tpu.vector_store %arg4[%c0_53, %c6_54, %c0_55, %c0_56], %81 {strides = array<i32>} : memref<1x9x8x128xf32, #tpu.memory_space<vmem>>, vector<1x1x8x128xf32>,
    %82 = arith.mulf %26, %49 : vector<16x128xf32>
    %c0_57 = arith.constant 0 : index
    %c2_58 = arith.constant 2 : index
    %c0_59 = arith.constant 0 : index
    %c0_60 = arith.constant 0 : index
    %83 = vector.load %arg3[%c0_57, %c2_58, %c0_59, %c0_60] : memref<1x4x16x128xbf16, #tpu.memory_space<vmem>>, vector<1x1x16x128xbf16>
    %84 = vector.shape_cast %83 : vector<1x1x16x128xbf16> to vector<16x128xbf16>
    %85 = arith.extf %84 : vector<16x128xbf16> to vector<16x128xf32>
    %c0_61 = arith.constant 0 : index
    %c1_62 = arith.constant 1 : index
    %c0_63 = arith.constant 0 : index
    %c0_64 = arith.constant 0 : index
    %86 = vector.load %arg4[%c0_61, %c1_62, %c0_63, %c0_64] : memref<1x9x8x128xf32, #tpu.memory_space<vmem>>, vector<1x1x8x128xf32>
    %87 = vector.shape_cast %86 : vector<1x1x8x128xf32> to vector<8x128xf32>
    %88 = arith.mulf %82, %85 : vector<16x128xf32>
    %89 = vector.extract_strided_slice %88 {offsets = [0, 0], sizes = [8, 128], strides = [1, 1]} : vector<16x128xf32> to vector<8x128xf32>
    %90 = vector.extract_strided_slice %88 {offsets = [8, 0], sizes = [8, 128], strides = [1, 1]} : vector<16x128xf32> to vector<8x128xf32>
    %91 = arith.addf %89, %90 : vector<8x128xf32>
    %92 = arith.addf %87, %91 : vector<8x128xf32>
    %c0_65 = arith.constant 0 : index
    %c1_66 = arith.constant 1 : index
    %c0_67 = arith.constant 0 : index
    %c0_68 = arith.constant 0 : index
    %93 = vector.load %arg4[%c0_65, %c1_66, %c0_67, %c0_68] : memref<1x9x8x128xf32, #tpu.memory_space<vmem>>, vector<1x1x8x128xf32>
    %94 = vector.shape_cast %93 : vector<1x1x8x128xf32> to vector<8x128xf32>
    %95 = vector.shape_cast %92 : vector<8x128xf32> to vector<1x1x8x128xf32>
    tpu.vector_store %arg4[%c0_65, %c1_66, %c0_67, %c0_68], %95 {strides = array<i32>} : memref<1x9x8x128xf32, #tpu.memory_space<vmem>>, vector<1x1x8x128xf32>,
    %c0_69 = arith.constant 0 : index
    %c4 = arith.constant 4 : index
    %c0_70 = arith.constant 0 : index
    %c0_71 = arith.constant 0 : index
    %96 = vector.load %arg4[%c0_69, %c4, %c0_70, %c0_71] : memref<1x9x8x128xf32, #tpu.memory_space<vmem>>, vector<1x1x8x128xf32>
    %97 = vector.shape_cast %96 : vector<1x1x8x128xf32> to vector<8x128xf32>
    %98 = vector.extract_strided_slice %85 {offsets = [0, 0], sizes = [8, 128], strides = [1, 1]} : vector<16x128xf32> to vector<8x128xf32>
    %99 = vector.extract_strided_slice %85 {offsets = [8, 0], sizes = [8, 128], strides = [1, 1]} : vector<16x128xf32> to vector<8x128xf32>
    %100 = arith.addf %98, %99 : vector<8x128xf32>
    %101 = arith.addf %97, %100 : vector<8x128xf32>
    %c0_72 = arith.constant 0 : index
    %c4_73 = arith.constant 4 : index
    %c0_74 = arith.constant 0 : index
    %c0_75 = arith.constant 0 : index
    %102 = vector.load %arg4[%c0_72, %c4_73, %c0_74, %c0_75] : memref<1x9x8x128xf32, #tpu.memory_space<vmem>>, vector<1x1x8x128xf32>
    %103 = vector.shape_cast %102 : vector<1x1x8x128xf32> to vector<8x128xf32>
    %104 = vector.shape_cast %101 : vector<8x128xf32> to vector<1x1x8x128xf32>
    tpu.vector_store %arg4[%c0_72, %c4_73, %c0_74, %c0_75], %104 {strides = array<i32>} : memref<1x9x8x128xf32, #tpu.memory_space<vmem>>, vector<1x1x8x128xf32>,
    %c0_76 = arith.constant 0 : index
    %c7 = arith.constant 7 : index
    %c0_77 = arith.constant 0 : index
    %c0_78 = arith.constant 0 : index
    %105 = vector.load %arg4[%c0_76, %c7, %c0_77, %c0_78] : memref<1x9x8x128xf32, #tpu.memory_space<vmem>>, vector<1x1x8x128xf32>
    %106 = vector.shape_cast %105 : vector<1x1x8x128xf32> to vector<8x128xf32>
    %107 = vector.extract_strided_slice %82 {offsets = [0, 0], sizes = [8, 128], strides = [1, 1]} : vector<16x128xf32> to vector<8x128xf32>
    %108 = vector.extract_strided_slice %82 {offsets = [8, 0], sizes = [8, 128], strides = [1, 1]} : vector<16x128xf32> to vector<8x128xf32>
    %109 = arith.addf %107, %108 : vector<8x128xf32>
    %110 = arith.addf %106, %109 : vector<8x128xf32>
    %c0_79 = arith.constant 0 : index
    %c7_80 = arith.constant 7 : index
    %c0_81 = arith.constant 0 : index
    %c0_82 = arith.constant 0 : index
    %111 = vector.load %arg4[%c0_79, %c7_80, %c0_81, %c0_82] : memref<1x9x8x128xf32, #tpu.memory_space<vmem>>, vector<1x1x8x128xf32>
    %112 = vector.shape_cast %111 : vector<1x1x8x128xf32> to vector<8x128xf32>
    %113 = vector.shape_cast %110 : vector<8x128xf32> to vector<1x1x8x128xf32>
    tpu.vector_store %arg4[%c0_79, %c7_80, %c0_81, %c0_82], %113 {strides = array<i32>} : memref<1x9x8x128xf32, #tpu.memory_space<vmem>>, vector<1x1x8x128xf32>,
    %114 = arith.mulf %31, %49 : vector<16x128xf32>
    %c0_83 = arith.constant 0 : index
    %c3_84 = arith.constant 3 : index
    %c0_85 = arith.constant 0 : index
    %c0_86 = arith.constant 0 : index
    %115 = vector.load %arg3[%c0_83, %c3_84, %c0_85, %c0_86] : memref<1x4x16x128xbf16, #tpu.memory_space<vmem>>, vector<1x1x16x128xbf16>
    %116 = vector.shape_cast %115 : vector<1x1x16x128xbf16> to vector<16x128xbf16>
    %117 = arith.extf %116 : vector<16x128xbf16> to vector<16x128xf32>
    %c0_87 = arith.constant 0 : index
    %c2_88 = arith.constant 2 : index
    %c0_89 = arith.constant 0 : index
    %c0_90 = arith.constant 0 : index
    %118 = vector.load %arg4[%c0_87, %c2_88, %c0_89, %c0_90] : memref<1x9x8x128xf32, #tpu.memory_space<vmem>>, vector<1x1x8x128xf32>
    %119 = vector.shape_cast %118 : vector<1x1x8x128xf32> to vector<8x128xf32>
    %120 = arith.mulf %114, %117 : vector<16x128xf32>
    %121 = vector.extract_strided_slice %120 {offsets = [0, 0], sizes = [8, 128], strides = [1, 1]} : vector<16x128xf32> to vector<8x128xf32>
    %122 = vector.extract_strided_slice %120 {offsets = [8, 0], sizes = [8, 128], strides = [1, 1]} : vector<16x128xf32> to vector<8x128xf32>
    %123 = arith.addf %121, %122 : vector<8x128xf32>
    %124 = arith.addf %119, %123 : vector<8x128xf32>
    %c0_91 = arith.constant 0 : index
    %c2_92 = arith.constant 2 : index
    %c0_93 = arith.constant 0 : index
    %c0_94 = arith.constant 0 : index
    %125 = vector.load %arg4[%c0_91, %c2_92, %c0_93, %c0_94] : memref<1x9x8x128xf32, #tpu.memory_space<vmem>>, vector<1x1x8x128xf32>
    %126 = vector.shape_cast %125 : vector<1x1x8x128xf32> to vector<8x128xf32>
    %127 = vector.shape_cast %124 : vector<8x128xf32> to vector<1x1x8x128xf32>
    tpu.vector_store %arg4[%c0_91, %c2_92, %c0_93, %c0_94], %127 {strides = array<i32>} : memref<1x9x8x128xf32, #tpu.memory_space<vmem>>, vector<1x1x8x128xf32>,
    %c0_95 = arith.constant 0 : index
    %c5 = arith.constant 5 : index
    %c0_96 = arith.constant 0 : index
    %c0_97 = arith.constant 0 : index
    %128 = vector.load %arg4[%c0_95, %c5, %c0_96, %c0_97] : memref<1x9x8x128xf32, #tpu.memory_space<vmem>>, vector<1x1x8x128xf32>
    %129 = vector.shape_cast %128 : vector<1x1x8x128xf32> to vector<8x128xf32>
    %130 = vector.extract_strided_slice %117 {offsets = [0, 0], sizes = [8, 128], strides = [1, 1]} : vector<16x128xf32> to vector<8x128xf32>
    %131 = vector.extract_strided_slice %117 {offsets = [8, 0], sizes = [8, 128], strides = [1, 1]} : vector<16x128xf32> to vector<8x128xf32>
    %132 = arith.addf %130, %131 : vector<8x128xf32>
    %133 = arith.addf %129, %132 : vector<8x128xf32>
    %c0_98 = arith.constant 0 : index
    %c5_99 = arith.constant 5 : index
    %c0_100 = arith.constant 0 : index
    %c0_101 = arith.constant 0 : index
    %134 = vector.load %arg4[%c0_98, %c5_99, %c0_100, %c0_101] : memref<1x9x8x128xf32, #tpu.memory_space<vmem>>, vector<1x1x8x128xf32>
    %135 = vector.shape_cast %134 : vector<1x1x8x128xf32> to vector<8x128xf32>
    %136 = vector.shape_cast %133 : vector<8x128xf32> to vector<1x1x8x128xf32>
    tpu.vector_store %arg4[%c0_98, %c5_99, %c0_100, %c0_101], %136 {strides = array<i32>} : memref<1x9x8x128xf32, #tpu.memory_space<vmem>>, vector<1x1x8x128xf32>,
    %c0_102 = arith.constant 0 : index
    %c8 = arith.constant 8 : index
    %c0_103 = arith.constant 0 : index
    %c0_104 = arith.constant 0 : index
    %137 = vector.load %arg4[%c0_102, %c8, %c0_103, %c0_104] : memref<1x9x8x128xf32, #tpu.memory_space<vmem>>, vector<1x1x8x128xf32>
    %138 = vector.shape_cast %137 : vector<1x1x8x128xf32> to vector<8x128xf32>
    %139 = vector.extract_strided_slice %114 {offsets = [0, 0], sizes = [8, 128], strides = [1, 1]} : vector<16x128xf32> to vector<8x128xf32>
    %140 = vector.extract_strided_slice %114 {offsets = [8, 0], sizes = [8, 128], strides = [1, 1]} : vector<16x128xf32> to vector<8x128xf32>
    %141 = arith.addf %139, %140 : vector<8x128xf32>
    %142 = arith.addf %138, %141 : vector<8x128xf32>
    %c0_105 = arith.constant 0 : index
    %c8_106 = arith.constant 8 : index
    %c0_107 = arith.constant 0 : index
    %c0_108 = arith.constant 0 : index
    %143 = vector.load %arg4[%c0_105, %c8_106, %c0_107, %c0_108] : memref<1x9x8x128xf32, #tpu.memory_space<vmem>>, vector<1x1x8x128xf32>
    %144 = vector.shape_cast %143 : vector<1x1x8x128xf32> to vector<8x128xf32>
    %145 = vector.shape_cast %142 : vector<8x128xf32> to vector<1x1x8x128xf32>
    tpu.vector_store %arg4[%c0_105, %c8_106, %c0_107, %c0_108], %145 {strides = array<i32>} : memref<1x9x8x128xf32, #tpu.memory_space<vmem>>, vector<1x1x8x128xf32>,
    return
  }
  func.func @transform_0(%arg0: i32, %arg1: i32) -> (i32, i32, i32, i32) {
    %c0_i32 = arith.constant 0 : i32
    %c0_i32_0 = arith.constant 0 : i32
    %c0_i32_1 = arith.constant 0 : i32
    return %arg0, %c0_i32, %arg1, %c0_i32_0 : i32, i32, i32, i32
  }
  func.func @transform_1(%arg0: i32, %arg1: i32) -> (i32, i32, i32, i32) {
    %c0_i32 = arith.constant 0 : i32
    %c0_i32_0 = arith.constant 0 : i32
    %c0_i32_1 = arith.constant 0 : i32
    return %arg0, %c0_i32, %arg1, %c0_i32_0 : i32, i32, i32, i32
  }
  func.func @transform_2(%arg0: i32, %arg1: i32) -> (i32, i32, i32, i32) {
    %c0_i32 = arith.constant 0 : i32
    %c0_i32_0 = arith.constant 0 : i32
    %c0_i32_1 = arith.constant 0 : i32
    %c0_i32_2 = arith.constant 0 : i32
    return %arg0, %c0_i32, %c0_i32_0, %c0_i32_1 : i32, i32, i32, i32
  }
}

</mosaic_0001>

<bundles_post_ra>
// kernel: tpu_custom_call.1
= control target key start
LH: loop header
LB: loop body
LE: loop exit
PB: predicated region body
PF: predicated region fallthrough
CT: control target
= control target key end

     0   :  { %s1028_s0 = inlined_call_operand.hbm [shape: f32[2,4,16,128], index: 0, kind: input, shape index: {}]   ;;  %s1029_s1 = inlined_call_operand.hbm [shape: bf16[2,4,16,128], index: 1, kind: input, shape index: {}]   ;;  %s1030_s2 = inlined_call_operand.hbm [shape: f32[2,9,8,128], index: 2, kind: output, shape index: {}]  }
   0x1   :  { %1031 = sst [smem:[#allocation11_spill]] %s1028_s0 }
   0x2   :  { %7 = vsyncpa [#allocation3], 0 }
   0x3   :  { %9 = vsyncpa [#allocation3 + $0x1], 0 }
   0x4   :  { %10 = vsyncpa [#allocation6], 0 }
   0x5   :  { %12 = vsyncpa [#allocation6 + $0x1], 0 }
   0x6   :  { %13 = vsyncpa [#allocation4], 0 }
   0x7   :  { %15 = vsyncpa [#allocation4 + $0x1], 0  ;;  %s836_s9 = smov 0   ;;  %s838_s10 = smov 0  }
   0x8   :  { %s840_s11 = smov 0   ;;  %s842_s12 = smov 0  }
   0x9   :  { %s844_s13 = smov 0   ;;  %s846_s14 = smov 0  }
   0xa LB: > { %s510_s15 = sadd.s32 4294967295, %s813_s14   ;;  %s511_s16 = sadd.s32 4294967294, %s813_s14   ;;  %s813_s14 = sphi %s846_s14, %s21_s14   ;;  %s809_s13 = sphi %s844_s13, %s1042_s13   ;;  %s805_s12 = sphi %s842_s12, %s1041_s12   ;;  %s801_s11 = sphi %s840_s11, %s1040_s11   ;;  %s797_s10 = sphi %s838_s10, %s1039_s10   ;;  %s793_s9 = sphi %s836_s9, %s1038_s9  }
   0xb   : > { %s33_s17 = sadd.s32 1, %s809_s13  ;;  %s42_s18 = sadd.s32 1, %s801_s11 }
   0xc   : > { %p35_p0 = scmp.ge.s32.totalorder %s33_s17, 2  ;;  %p49_p1 = scmp.ne.s32.totalorder %s801_s11, %s797_s10 }
   0xd   : > { %p50_p2 = scmp.eq.s32.totalorder %s813_s14, 0  ;;  %p55_p3 = scmp.ne.s32.totalorder %s797_s10, %s793_s9 }
   0xe   : > { %s1044_s17 = smov (%p35_p0, %s33_s17), 0  ;;  %p56_p5 = scmp.eq.s32.totalorder %s510_s15, 0 }
   0xf   : > { %p877_p4 = por %p50_p2, %p49_p1  ;;  %s37_s20 = ssub.s32 %s809_s13, %s1044_s17 }
  0x10   : > { %p107_p6 = scmp.eq.s32.totalorder %s510_s15, 1  ;;  %p40_p7 = scmp.eq.s32.totalorder %s37_s20, 0 }
  0x11   : > { %p883_p8 = por %p56_p5, %p55_p3  ;;  %p113_p10 = scmp.eq.s32.totalorder %s511_s16, 1 }
  0x12   : > { %p887_p9 = por %p107_p6, %p49_p1  ;;  %p513_p12 = scmp.ge.s32.totalorder %s813_s14, 2 }
  0x13   : > { %s892_s23 = scalar_select %p40_p7, %s801_s11, %s42_s18  }
  0x14   : > { %p894_p11 = por %p113_p10, %p55_p3  ;;  %p590_p13 = scmp.lt.s32.totalorder %s813_s14, 2 }
  0x15   : > { %s901_s25 = sand.u32 1, %s801_s11   ;;  %s554_s27 = sshll.u32 %s809_s13, 6 }
  0x16   : > { %s514_s26 = sshll.u32 %s901_s25, 6  ;;  %s1036_s0 = sld [smem:[#allocation11_spill]] }
  0x17   : > { %s137_s3 = scalar_lea.vmem [#allocation2], %s514_s26  ;;  %p910_p0 = pnand %p590_p13, %p877_p4 }
  0x18   : > { %s147_s4 = sshll.u32 %s137_s3, 4  ;;  %p520_p1 = scmp.ge.s32.totalorder %s813_s14, 1  ;;  %s148_s4 = int_to_ptr.vmem [resolvable:$true] %s147_s4 }
  0x19   : > { %s134_s7 = scalar_lea.sflag [#allocation3], %s901_s25  ;;  %s815_s8 = smov 128  }
  0x1a   : > { %s816_s15 = smov 8   ;;  %p179_p2 = scmp.lt.s32.totalorder %s813_s14, 3 }
  0x1b   : > { %s517_s16 = sshll.u32 %s901_s25, 5  ;;  %s555_s18 = sshll.u32 %s809_s13, 5 }
  0x1c   : > { %s144_s30 = scalar_lea.hbm %s1036_s0, %s554_s27  ;;  %p180_p3 = pnand %p520_p1, %p179_p2 }
  0x1d   : > { %s145_s5 = sshll.u32 %s144_s30, 4  ;;  %s168_s19 = scalar_lea.hbm %s1029_s1, %s555_s18  ;;  %s146_s5 = int_to_ptr.hbm [resolvable:$true] %s145_s5 }
  0x1e   : > { %582 = dma.hbm_to_vmem [thread:$0]  (!%p910_p0), %s146_s5, 1024, %s148_s4, %s134_s7, %s815_s8, %s815_s8, %s816_s15  }
  0x1f   : > { %s161_s27 = scalar_lea.vmem [#allocation5], %s517_s16  ;;  %s169_s29 = sshll.u32 %s168_s19, 4  ;;  %s170_s29 = int_to_ptr.hbm [resolvable:$true] %s169_s29 }
  0x20   : > { %s171_s28 = sshll.u32 %s161_s27, 4  ;;  %s158_s30 = scalar_lea.sflag [#allocation6], %s901_s25  ;;  %s172_s28 = int_to_ptr.vmem [resolvable:$true] %s171_s28 }
  0x21   : > { %s817_s3 = smov 64   ;;  %s818_s0 = smov 4  }
  0x22   : > { %585 = dma.hbm_to_vmem [thread:$0]  (!%p910_p0), %s170_s29, 512, %s172_s28, %s158_s30, %s817_s3, %s817_s3, %s818_s0  }
  0x23   : > { %183 = sbr.rel (%p180_p3) target bundleno = 99 (0x63), region = 28  ;;  %s928_s4 = sand.u32 (!%p180_p3), 1, %s797_s10  }
  0x24   : > { %s521_s5 = sshll.u32 (!%p180_p3), %s928_s4, 6  ;;  %s186_s7 = scalar_lea.sflag (!%p180_p3), [#allocation3], %s928_s4 }
  0x25   : > { %s189_s8 = scalar_lea.vmem (!%p180_p3), [#allocation2], %s521_s5 }
  0x28   : > { %780 = dma.done.wait (%p883_p8), %s186_s7, 1024  }
  0x29   : > { %782 = vsyncadd (%p883_p8), %s186_s7, 4294966272  ;;  %s522_s25 = sshll.u32 %s928_s4, 5  ;;  %s196_s0 = scalar_lea.sflag [#allocation6], %s928_s4 }
  0x2a   : > { %s938_s6 = scalar_lea.vmem [#allocation5], %s522_s25 }
  0x2b   : > { %784 = dma.done.wait (%p883_p8), %s196_s0, 512  }
  0x2c   : > { %786 = vsyncadd (%p883_p8), %s196_s0, 4294966784  ;;  %v241_v0 = vld [vmem:[%s189_s8] sm:$0xff]  ;;  %v242_v1 = vld [vmem:[%s189_s8 + $0x8] sm:$0xff]  ;;  %s571_s21 = smul.u32 72, %s928_s4  ;;  %v296_v43 = vlaneseq  ;;  %s385_s27 = scalar_lea.sflag [#allocation4], %s928_s4 }
  0x2d   : > { %v523_v2 = vld [vmem:[%s189_s8 + $0x10] sm:$0xff]  ;;  %v524_v3 = vld [vmem:[%s189_s8 + $0x18] sm:$0xff]  ;;  %v525_v5 = vld [vmem:[%s189_s8 + $0x20] sm:$0xff]  ;;  %s572_s16 = smul.u32 72, %s805_s12  ;;  %s747_s5 = scalar_lea.hbm %s1030_s2, 144 }
  0x2e   : > { %v246_v4 = vmax.f32 %v241_v0, %v523_v2  ;;  %v526_v6 = vld [vmem:[%s189_s8 + $0x28] sm:$0xff]  ;;  %v247_v7 = vmax.f32 %v242_v1, %v524_v3  ;;  %v527_v8 = vld [vmem:[%s189_s8 + $0x30] sm:$0xff]  ;;  %v528_v10 = vld [vmem:[%s189_s8 + $0x38] sm:$0xff]  ;;  %s970_s15 = scalar_lea.vmem [#allocation7], %s571_s21  ;;  %v297_v50 = vshrl.u32 %v296_v43, 7  ;;  %v300_v59 = vand.u32 127, %v296_v43 }
  0x2f   : > { %v946_v21 = vld [vmem:[%s938_s6 + $0x8] sm:$0xff]   ;;  %v949_v24 = vld [vmem:[%s938_s6 + $0x10] sm:$0xff]   ;;  %v954_v32 = vld [vmem:[%s938_s6 + $0x18] sm:$0xff]   ;;  %s396_s20 = scalar_lea.hbm %s1030_s2, %s572_s16  ;;  %s397_s26 = sshll.u32 %s970_s15, 4  ;;  %s398_s26 = int_to_ptr.vmem [resolvable:$true] %s397_s26 }
  0x30   : > { %v251_v9 = vmax.f32 %v246_v4, %v525_v5  ;;  %v252_v11 = vmax.f32 %v247_v7, %v526_v6  ;;  %v558_v30 = vunpack.c.l.bf16 %v946_v21  ;;  %v559_v31 = vunpack.c.h.bf16 %v946_v21  ;;  %s399_s19 = sshll.u32 %s396_s20, 4  ;;  %s400_s19 = int_to_ptr.hbm [resolvable:$true] %s399_s19 }
  0x31   : > { %v562_v34 = vunpack.c.l.bf16 %v949_v24  ;;  %v563_v35 = vunpack.c.h.bf16 %v949_v24  ;;  %v566_v37 = vunpack.c.l.bf16 %v954_v32  ;;  %v567_v38 = vunpack.c.h.bf16 %v954_v32  ;;  %s741_s28 = sshra.s32 %s400_s19, 4  ;;  %s742_s28 = int_to_ptr.hbm [resolvable:$true] %s741_s28 }
  0x32   : > { %v256_v12 = vmax.f32 %v251_v9, %v527_v8  ;;  %v257_v13 = vmax.f32 %v252_v11, %v528_v10  ;;  %v328_v36 = vadd.f32 %v559_v31, %v558_v30  ;;  %v298_v58 = vadd.s32 8, %v297_v50  ;;  %s743_s29 = scalar_lea.hbm %s742_s28, 72  ;;  %p748_p7 = scmp.lt.s32.totalorder %s742_s28, %s1030_s2 }
  0x33   : > { %v352_v40 = vadd.f32 %v563_v35, %v562_v34  ;;  %v376_v41 = vadd.f32 %v567_v38, %v566_v37  ;;  %v305_v60 = vmul.u32 128, %v297_v50  ;;  %p744_p4 = scmp.ne.s32.totalorder %s742_s28, %s743_s29  ;;  %p749_p8 = scmp.lt.s32.totalorder %s747_s5, %s743_s29 }
  0x34   : > { %v258_v14 = vsub.f32 %v241_v0, %v256_v12  ;;  %v264_v15 = vsub.f32 %v523_v2, %v256_v12  ;;  %v272_v16 = vsub.f32 %v525_v5, %v256_v12  ;;  %v259_v17 = vsub.f32 %v242_v1, %v257_v13  ;;  %532 = vst [vmem:[%s970_s15 + $0x18] sm:$0xff] %v328_v36 }
  0x35   : > { %v265_v18 = vsub.f32 %v524_v3, %v257_v13  ;;  %v273_v19 = vsub.f32 %v526_v6, %v257_v13  ;;  %v280_v20 = vsub.f32 %v527_v8, %v256_v12  ;;  %v281_v28 = vsub.f32 %v528_v10, %v257_v13  ;;  %540 = vst [vmem:[%s970_s15 + $0x20] sm:$0xff] %v352_v40  ;;  %p745_p5 = pnand %p744_p4, %p887_p9  ;;  %p750_p10 = por %p749_p8, %p748_p7 }
  0x36   : > { %v260_v22 = vmul.f32 1.442695, %v258_v14  ;;  %v266_v23 = vmul.f32 1.442695, %v264_v15  ;;  %v262_v25 = vmul.f32 1.442695, %v259_v17  ;;  %v307_v63 = vadd.s32 %v305_v60, %v300_v59 }
  0x37   : > { %v268_v26 = vmul.f32 1.442695, %v265_v18  ;;  %v274_v27 = vmul.f32 1.442695, %v272_v16  ;;  %v276_v29 = vmul.f32 1.442695, %v273_v19  ;;  %p746_p6 = pneg %p745_p5 }
  0x38   : > { %647 = vpow2.f32 %v260_v22  ;;  %v282_v33 = vmul.f32 1.442695, %v280_v20  ;;  %v284_v39 = vmul.f32 1.442695, %v281_v28  ;;  %548 = vst [vmem:[%s970_s15 + $0x28] sm:$0xff] %v376_v41  ;;  %v306_v61 = vmul.u32 128, %v298_v58 }
  0x39   : > { %649 = vpow2.f32 %v262_v25  ;;  %vm309_vm0 = vcmp.lt.s32.totalorder %v307_v63, 256  ;;  %p751_p13 = pnand %p750_p10, %p746_p6 }
  0x3a   : > { %651 = vpow2.f32 %v266_v23  ;;  %v308_v2 = vadd.s32 %v306_v61, %v300_v59 }
  0x3b   : > { %653 = vpow2.f32 %v268_v26 }
  0x3c   : > { %655 = vpow2.f32 %v274_v27  ;;  %vm310_vm1 = vcmp.lt.s32.totalorder %v308_v2, 256 }
  0x3d   : > { %657 = vpow2.f32 %v276_v29 }
  0x3e   : > { %v648_v42 = vpop.eup %647  ;;  %659 = vpow2.f32 %v282_v33 }
  0x3f   : > { %v650_v44 = vpop.eup %649  ;;  %661 = vpow2.f32 %v284_v39 }
  0x40   : > { %v652_v45 = vpop.eup %651 }
  0x41   : > { %v654_v46 = vpop.eup %653  ;;  %v270_v47 = vadd.f32 %v652_v45, %v648_v42 }
  0x42   : > { %v656_v48 = vpop.eup %655  ;;  %v271_v49 = vadd.f32 %v654_v46, %v650_v44 }
  0x43   : > { %v658_v51 = vpop.eup %657  ;;  %v278_v52 = vadd.f32 %v656_v48, %v270_v47 }
  0x44   : > { %v660_v53 = vpop.eup %659  ;;  %v279_v54 = vadd.f32 %v658_v51, %v271_v49 }
  0x45   : > { %v662_v55 = vpop.eup %661  ;;  %v286_v56 = vadd.f32 %v660_v53, %v278_v52 }
  0x46   : > { %v287_v57 = vadd.f32 %v662_v55, %v279_v54 }
  0x47   : > { %663 = vrcp.f32 %v286_v56 }
  0x48   : > { %665 = vrcp.f32 %v287_v57 }
  0x4d   : > { %v664_v62 = vpop.eup %663 }
  0x4e   : > { %v666_v0 = vpop.eup %665  ;;  %v290_v1 = vmul.f32 %v664_v62, %v286_v56 }
  0x4f   : > { %v291_v3 = vmul.f32 %v666_v0, %v287_v57 }
  0x50   : > { %v292_v4 = vsub.f32 2.0, %v290_v1 }
  0x51   : > { %v293_v5 = vsub.f32 2.0, %v291_v3 }
  0x52   : > { %v294_v6 = vmul.f32 %v664_v62, %v292_v4 }
  0x53   : > { %v295_v7 = vmul.f32 %v666_v0, %v293_v5 }
  0x54   : > { %v311_v8 = vsel %vm309_vm0, %v294_v6, 0.0 }
  0x55   : > { %v312_v9 = vsel %vm310_vm1, %v295_v7, 0.0  ;;  %v313_v10 = vmul.f32 %v652_v45, %v311_v8  ;;  %v336_v11 = vmul.f32 %v656_v48, %v311_v8  ;;  %v360_v12 = vmul.f32 %v660_v53, %v311_v8 }
  0x56   : > { %v314_v13 = vmul.f32 %v654_v46, %v312_v9  ;;  %v337_v14 = vmul.f32 %v658_v51, %v312_v9  ;;  %v361_v15 = vmul.f32 %v662_v55, %v312_v9 }
  0x57   : > { %v321_v16 = vmul.f32 %v558_v30, %v313_v10  ;;  %v345_v17 = vmul.f32 %v562_v34, %v336_v11  ;;  %v369_v18 = vmul.f32 %v566_v37, %v360_v12 }
  0x58   : > { %v322_v19 = vmul.f32 %v559_v31, %v314_v13  ;;  %v333_v20 = vadd.f32 %v314_v13, %v313_v10  ;;  %v346_v22 = vmul.f32 %v563_v35, %v337_v14  ;;  %v357_v23 = vadd.f32 %v337_v14, %v336_v11 }
  0x59   : > { %v370_v25 = vmul.f32 %v567_v38, %v361_v15  ;;  %v381_v26 = vadd.f32 %v361_v15, %v360_v12 }
  0x5a   : > { %v323_v27 = vadd.f32 %v322_v19, %v321_v16  ;;  %v347_v21 = vadd.f32 %v346_v22, %v345_v17  ;;  %534 = vst [vmem:[%s970_s15 + $0x30] sm:$0xff] %v333_v20 }
  0x5b   : > { %v371_v28 = vadd.f32 %v370_v25, %v369_v18  ;;  %542 = vst [vmem:[%s970_s15 + $0x38] sm:$0xff] %v357_v23 }
  0x5c   : > { %325 = vst [vmem:[%s970_s15] sm:$0xff] %v323_v27 }
  0x5d   : > { %538 = vst [vmem:[%s970_s15 + $0x8] sm:$0xff] %v347_v21 }
  0x5e   : > { %546 = vst [vmem:[%s970_s15 + $0x10] sm:$0xff] %v371_v28 }
  0x5f   : > { %550 = vst [vmem:[%s970_s15 + $0x40] sm:$0xff] %v381_v26 }
  0x60   : > { %754 = shalt.err (!%p751_p13)
}
  0x61   : > { %s819_s4 = smov 128   ;;  %s820_s25 = smov 8  }
  0x62   : > { %577 = dma.vmem_to_hbm [thread:$0]  (%p887_p9), %s398_s26, 1152, %s400_s19, %s385_s27, %s819_s4, %s819_s4, %s820_s25  }
  0x63 PF: > { %s414_s0 = sand.u32 1, %s793_s9   ;;  %p587_p0 = pnand %p513_p12, %p894_p11 }
  0x64   : > { %s415_s6 = scalar_lea.sflag [#allocation4], %s414_s0 }
  0x65   : > { %p588_p1 = pneg %p587_p0 }
  0x67   : > { %788 = dma.done.wait (%p588_p1), %s415_s6, 1152  }
  0x68   : > { %790 = vsyncadd (%p588_p1), %s415_s6, 4294966144  ;;  %s21_s14 = sadd.s32 1, %s813_s14   ;;  %s1038_s9 = smov %s797_s10 }
  0x69   : > { %p18_p2 = scmp.ge.s32.totalorder %s21_s14, 4   ;;  %s1039_s10 = smov %s801_s11 }
  0x6a   : > { %s1040_s11 = smov %s892_s23  ;;  %s1041_s12 = smov %s809_s13 }
  0x6b   : > { %s1042_s13 = smov %s1044_s17  ;;  %20 = sbr.rel (!%p18_p2) target bundleno = 10 (0xa), region = 104 }
  0x70   :  { %421 = vsyncpa [#allocation3], 1 }
  0x71   :  { %423 = vsyncpa [#allocation3 + $0x1], 1 }
  0x72   :  { %424 = vsyncpa [#allocation6], 1 }
  0x73   :  { %426 = vsyncpa [#allocation6 + $0x1], 1 }
  0x74   :  { %427 = vsyncpa [#allocation4], 1 }
  0x75   :  { %429 = vsyncpa [#allocation4 + $0x1], 1 }

</bundles_post_ra>
